<compile_context>
chip_gen: v7x
topology: tpu7x:2x2x1
jax: 0.10.0
libtpu: 0.0.40
codegen_flags: <defaults>
</compile_context>

<pallas_src>
import functools

import jax
import jax.numpy as jnp
from jax import lax
from jax.experimental import pallas as pl
from jax.experimental.pallas import tpu as pltpu


def _round_up(x: int, m: int) -> int:
    return (x + m - 1) // m * m


def _cdiv(a: int, b: int) -> int:
    return (a + b - 1) // b


def _agg_kernel(a_ref, f_ref, o_ref, acc_ref, *rest,
                tk, n_valid, mask_k, normalize, features_resident):
    # a_ref: (tm, tk) tile of A; f_ref: (tk, Dp) or batch-resident (Kp, Dp);
    # o_ref: (tm, Dp); acc_ref: (tm, Dp) f32; rest[0]: (tm, 1) rowsum if normalize.
    rs_ref = rest[0] if normalize else None
    k = pl.program_id(2)
    nk = pl.num_programs(2)

    @pl.when(k == 0)
    def _init():
        acc_ref[...] = jnp.zeros_like(acc_ref)
        if normalize:
            rs_ref[...] = jnp.zeros_like(rs_ref)

    a = a_ref[...]
    if mask_k:
        # Zero the (undefined) trailing K columns of the edge tile; cheap VPU select,
        # removes the need to ever pad / copy the N^2 A array in HBM.
        col = lax.broadcasted_iota(jnp.int32, a.shape, 1)
        a = jnp.where(k * tk + col < n_valid, a, jnp.zeros_like(a))

    if features_resident:
        # Whole (Kp, Dp) features block lives in VMEM once per batch index;
        # slice the current K window instead of re-DMAing it per M tile.
        f = f_ref[pl.ds(pl.multiple_of(k * tk, tk), tk), :]
    else:
        f = f_ref[...]

    acc_ref[...] += jnp.dot(a, f, preferred_element_type=jnp.float32)
    if normalize:
        rs_ref[...] += jnp.sum(a.astype(jnp.float32), axis=1, keepdims=True)

    @pl.when(k == nk - 1)
    def _writeback():
        acc = acc_ref[...]
        if normalize:
            acc = acc * pl.reciprocal(rs_ref[...], approx=True)
        o_ref[...] = acc.astype(o_ref.dtype)


def mean_aggregator(features, A, *, tm=512, tk=1024, normalize=False,
                    features_resident_budget_bytes=4 << 20):
    """Pallas MeanAggregator.forward(features, A) = bmm(A, features).

    normalize=False (default): exact torch.bmm semantics (A assumed pre-normalized).
    normalize=True: A is a raw adjacency; row-normalization (A / rowsum) is fused
                    into the kernel epilogue (saves a full N^2 HBM pass upstream).
    A is consumed in whatever dtype it is stored in HBM (f32 or bf16); only the
    small features tensor is cast/padded wrapper-side.
    """
    B, N, D = features.shape
    assert A.shape == (B, N, N), f"A shape {A.shape} must be (B, N, N)"
    out_dtype = features.dtype

    # Keep A exactly as stored (dominant N^2 traffic); cast the cheap N*D tensor.
    if A.dtype != features.dtype:
        features = features.astype(A.dtype)

    # ---- tile geometry: lane-dense, (8,128)-legal, no padding of A ---------
    if N >= 128:
        tk = max(128, (min(tk, N) // 128) * 128)
    else:
        tk = N                       # single full-extent K block
    if N >= 8:
        tm = max(8, (min(tm, N) // 8) * 8)
    else:
        tm = N

    num_m = _cdiv(N, tm)
    # v7x shards the "parallel" grid axes over 2 TensorCores: guarantee >=2
    # parallel blocks for single-batch inputs.
    if B == 1 and num_m < 2 and N >= 16:
        tm = max(8, _round_up((N + 1) // 2, 8))
        num_m = _cdiv(N, tm)
    num_k = _cdiv(N, tk)
    mask_k = (num_k * tk) != N

    Kp = num_k * tk
    Dp = _round_up(D, 128)

    # features is the cheap (N*D) tensor: pad K rows (zeros) and D lanes.
    if (Kp, Dp) != (N, D):
        features = jnp.pad(features, ((0, 0), (0, Kp - N), (0, Dp - D)))

    a_item = jnp.dtype(A.dtype).itemsize
    f_item = jnp.dtype(features.dtype).itemsize
    o_item = jnp.dtype(out_dtype).itemsize

    features_resident = (Kp * Dp * f_item) <= features_resident_budget_bytes
    if features_resident:
        f_spec = pl.BlockSpec((pl.Squeezed(), Kp, Dp), lambda b, m, k: (b, 0, 0))
        f_buf_bytes = 2 * Kp * Dp * f_item
    else:
        f_spec = pl.BlockSpec((pl.Squeezed(), tk, Dp), lambda b, m, k: (b, k, 0))
        f_buf_bytes = 2 * tk * Dp * f_item

    scratch = [pltpu.VMEM((tm, Dp), jnp.float32)]
    if normalize:
        scratch.append(pltpu.VMEM((tm, 1), jnp.float32))

    vmem_needed = (2 * tm * tk * a_item + f_buf_bytes + 2 * tm * Dp * o_item
                   + tm * Dp * 4 + (tm * 128 * 4 if normalize else 0))
    vmem_limit = min(int(vmem_needed * 1.3) + (2 << 20), 64 << 20)

    cost = pl.CostEstimate(
        flops=2 * B * N * N * D + (B * N * N if normalize else 0),
        transcendentals=0,
        bytes_accessed=B * (N * N * a_item + N * D * f_item + N * D * o_item),
    )

    kernel = functools.partial(
        _agg_kernel, tk=tk, n_valid=N, mask_k=mask_k,
        normalize=normalize, features_resident=features_resident)

    out = pl.pallas_call(
        kernel,
        out_shape=jax.ShapeDtypeStruct((B, N, Dp), out_dtype),
        grid_spec=pltpu.PrefetchScalarGridSpec(
            num_scalar_prefetch=0,
            grid=(B, num_m, num_k),
            in_specs=[
                # A tile (tm, tk) at block (b, m, k); partial edge blocks are
                # handled by Pallas (K edge masked in-kernel, M edge discarded).
                pl.BlockSpec((pl.Squeezed(), tm, tk), lambda b, m, k: (b, m, k)),
                f_spec,
            ],
            # output tile resident across the K ("arbitrary") axis -> accumulator
            out_specs=pl.BlockSpec((pl.Squeezed(), tm, Dp), lambda b, m, k: (b, m, 0)),
            scratch_shapes=scratch,
        ),
        compiler_params=pltpu.CompilerParams(
            dimension_semantics=("parallel", "parallel", "arbitrary"),
            vmem_limit_bytes=vmem_limit,
        ),
        cost_estimate=cost,
    )(A, features)

    if Dp != D:
        out = out[:, :, :D]
    return out
    # TODO(synk): per-chip tile autotuning (tm/tk/Buffered depth) could be added via
    # pltpu.get_tpu_info(); defaults here are sized to fit v5e's 16 MiB scoped VMEM.


if __name__ == "__main__":
    # MeanAggregator has no parameters — nothing to initialize.
    key = jax.random.PRNGKey(0)
    k_feat, k_adj, k_feat2, k_adj2 = jax.random.split(key, 4)

    # ---- Test 1: aligned shapes, multiple K tiles, features-resident path ----
    B, N, D = 2, 256, 128
    features = jax.random.normal(k_feat, (B, N, D), dtype=jnp.float32)
    adj = (jax.random.uniform(k_adj, (B, N, N)) > 0.5).astype(jnp.float32)
    adj = adj + jnp.eye(N, dtype=jnp.float32)[None]          # self-loops
    A = adj / jnp.sum(adj, axis=-1, keepdims=True)            # row-normalized (mean agg)

    out = jax.block_until_ready(mean_aggregator(features, A, tm=128, tk=128))
    ref = jnp.einsum("bij,bjd->bid", A, features, precision=lax.Precision.HIGHEST)
    assert out.shape == (B, N, D)
    assert jnp.allclose(out, ref, atol=2e-3, rtol=2e-3), "mismatch (tiled f32)"

    # ---- Test 2: non-aligned N/D (K-edge mask, partial M store, streamed feats) ----
    B2, N2, D2 = 2, 200, 96
    features2 = jax.random.normal(k_feat2, (B2, N2, D2), dtype=jnp.float32)
    adj2 = (jax.random.uniform(k_adj2, (B2, N2, N2)) > 0.5).astype(jnp.float32)
    adj2 = adj2 + jnp.eye(N2, dtype=jnp.float32)[None]
    A2 = adj2 / jnp.sum(adj2, axis=-1, keepdims=True)

    out2 = jax.block_until_ready(
        mean_aggregator(features2, A2, tm=128, tk=128,
                        features_resident_budget_bytes=0))   # force streamed path
    ref2 = jnp.einsum("bij,bjd->bid", A2, features2, precision=lax.Precision.HIGHEST)
    assert out2.shape == (B2, N2, D2)
    assert jnp.allclose(out2, ref2, atol=2e-3, rtol=2e-3), "mismatch (padded/masked)"

    # ---- Test 3: A stored natively as bf16 in HBM (halved N^2 traffic) ----
    A_bf = A.astype(jnp.bfloat16)
    out3 = jax.block_until_ready(mean_aggregator(features, A_bf, tm=128, tk=128))
    ref3 = jnp.einsum("bij,bjd->bid", A_bf.astype(jnp.float32), features,
                      precision=lax.Precision.HIGHEST)
    assert out3.dtype == features.dtype
    assert jnp.allclose(out3, ref3, atol=5e-2, rtol=5e-2), "mismatch (bf16 A)"

    # ---- Test 4: fused row-normalization (raw adjacency in, mean agg out) ----
    out4 = jax.block_until_ready(
        mean_aggregator(features, adj, tm=128, tk=128, normalize=True))
    assert jnp.allclose(out4, ref, atol=1e-2, rtol=1e-2), "mismatch (fused normalize)"

    # ---- Test 5: B=1 with default tiles (v7x 2-TC M-split heuristic) ----
    out5 = jax.block_until_ready(mean_aggregator(features[:1], A[:1]))
    assert jnp.allclose(out5, ref[:1], atol=2e-3, rtol=2e-3), "mismatch (B=1 defaults)"

    print("KERNEL_OK")
</pallas_src>

<mosaic_0001>
module attributes {stable_mosaic.version = 11 : i64} {
  func.func @_agg_kernel(%arg0: i32, %arg1: i32, %arg2: i32, %arg3: memref<1x128x128xf32, #tpu.memory_space<vmem>>, %arg4: memref<1x256x128xf32, #tpu.memory_space<vmem>>, %arg5: memref<1x128x128xf32, #tpu.memory_space<vmem>>, %arg6: memref<128x128xf32, #tpu.memory_space<vmem>>) attributes {dimension_semantics = [#tpu.dimension_semantics<parallel>, #tpu.dimension_semantics<parallel>, #tpu.dimension_semantics<arbitrary>], iteration_bounds = array<i64: 2, 2, 2>, scalar_prefetch = 0 : i64, scratch_operands = 1 : i64, tpu.core_type = #tpu.core_type<tc>, window_params = [{transform_indices = @transform_0, window_bounds = array<i64: 1, 128, 128>}, {transform_indices = @transform_1, window_bounds = array<i64: 1, 256, 128>}, {transform_indices = @transform_2, window_bounds = array<i64: 1, 128, 128>}]} {
    %c0_i32 = arith.constant 0 : i32
    %0 = arith.cmpi eq, %arg2, %c0_i32 : i32
    %1 = arith.extui %0 : i1 to i32
    %c0_i32_0 = arith.constant 0 : i32
    %2 = arith.cmpi ne, %1, %c0_i32_0 : i32
    scf.if %2 {
      %cst_10 = arith.constant 0.000000e+00 : f32
      %17 = vector.broadcast %cst_10 : f32 to vector<128x128xf32>
      %c0_11 = arith.constant 0 : index
      %c0_12 = arith.constant 0 : index
      %18 = vector.load %arg6[%c0_11, %c0_12] : memref<128x128xf32, #tpu.memory_space<vmem>>, vector<128x128xf32>
      tpu.vector_store %arg6[%c0_11, %c0_12], %17 {strides = array<i32>} : memref<128x128xf32, #tpu.memory_space<vmem>>, vector<128x128xf32>,
    } else {
    }
    %c0 = arith.constant 0 : index
    %c0_1 = arith.constant 0 : index
    %c0_2 = arith.constant 0 : index
    %3 = vector.load %arg3[%c0, %c0_1, %c0_2] : memref<1x128x128xf32, #tpu.memory_space<vmem>>, vector<1x128x128xf32>
    %4 = vector.shape_cast %3 : vector<1x128x128xf32> to vector<128x128xf32>
    %c128_i32 = arith.constant 128 : i32
    %5 = arith.muli %arg2, %c128_i32 : i32
    %6 = tpu.assume_multiple %5, 128 : i32
    %c0_3 = arith.constant 0 : index
    %7 = arith.index_cast %6 : i32 to index
    %c0_4 = arith.constant 0 : index
    %8 = vector.load %arg4[%c0_3, %7, %c0_4] : memref<1x256x128xf32, #tpu.memory_space<vmem>>, vector<1x128x128xf32>
    %9 = vector.shape_cast %8 : vector<1x128x128xf32> to vector<128x128xf32>
    %c0_5 = arith.constant 0 : index
    %c0_6 = arith.constant 0 : index
    %10 = vector.load %arg6[%c0_5, %c0_6] : memref<128x128xf32, #tpu.memory_space<vmem>>, vector<128x128xf32>
    %cst = arith.constant dense<0.000000e+00> : vector<128x128xf32>
    %11 = tpu.matmul %4, %9, %cst {dimension_numbers = #tpu.dot_dimension_numbers<[1], [0], [0], [1], [0, 0, 1, 1], [], []>} : vector<128x128xf32>, vector<128x128xf32>, vector<128x128xf32> -> vector<128x128xf32>
    %12 = arith.addf %10, %11 : vector<128x128xf32>
    %c0_7 = arith.constant 0 : index
    %c0_8 = arith.constant 0 : index
    %13 = vector.load %arg6[%c0_7, %c0_8] : memref<128x128xf32, #tpu.memory_space<vmem>>, vector<128x128xf32>
    tpu.vector_store %arg6[%c0_7, %c0_8], %12 {strides = array<i32>} : memref<128x128xf32, #tpu.memory_space<vmem>>, vector<128x128xf32>,
    %c1_i32 = arith.constant 1 : i32
    %14 = arith.cmpi eq, %arg2, %c1_i32 : i32
    %15 = arith.extui %14 : i1 to i32
    %c0_i32_9 = arith.constant 0 : i32
    %16 = arith.cmpi ne, %15, %c0_i32_9 : i32
    scf.if %16 {
      %c0_10 = arith.constant 0 : index
      %c0_11 = arith.constant 0 : index
      %17 = vector.load %arg6[%c0_10, %c0_11] : memref<128x128xf32, #tpu.memory_space<vmem>>, vector<128x128xf32>
      %c0_12 = arith.constant 0 : index
      %c0_13 = arith.constant 0 : index
      %c0_14 = arith.constant 0 : index
      %18 = vector.load %arg5[%c0_12, %c0_13, %c0_14] : memref<1x128x128xf32, #tpu.memory_space<vmem>>, vector<1x128x128xf32>
      %19 = vector.shape_cast %18 : vector<1x128x128xf32> to vector<128x128xf32>
      %20 = vector.shape_cast %17 : vector<128x128xf32> to vector<1x128x128xf32>
      tpu.vector_store %arg5[%c0_12, %c0_13, %c0_14], %20 {strides = array<i32>} : memref<1x128x128xf32, #tpu.memory_space<vmem>>, vector<1x128x128xf32>,
    } else {
    }
    return
  }
  func.func @transform_0(%arg0: i32, %arg1: i32, %arg2: i32) -> (i32, i32, i32) {
    %c0_i32 = arith.constant 0 : i32
    return %arg0, %arg1, %arg2 : i32, i32, i32
  }
  func.func @transform_1(%arg0: i32, %arg1: i32, %arg2: i32) -> (i32, i32, i32) {
    %c0_i32 = arith.constant 0 : i32
    %c0_i32_0 = arith.constant 0 : i32
    %c0_i32_1 = arith.constant 0 : i32
    return %arg0, %c0_i32, %c0_i32_0 : i32, i32, i32
  }
  func.func @transform_2(%arg0: i32, %arg1: i32, %arg2: i32) -> (i32, i32, i32) {
    %c0_i32 = arith.constant 0 : i32
    %c0_i32_0 = arith.constant 0 : i32
    return %arg0, %arg1, %c0_i32 : i32, i32, i32
  }
}

</mosaic_0001>

<bundles_post_ra>
// kernel: tpu_custom_call.1
= control target key start
LH: loop header
LB: loop body
LE: loop exit
PB: predicated region body
PF: predicated region fallthrough
CT: control target
= control target key end

     0   :  { %s1654_s0 = inlined_call_operand.hbm [shape: f32[2,256,256], index: 0, kind: input, shape index: {}]   ;;  %s1655_s1 = inlined_call_operand.hbm [shape: f32[2,256,128], index: 1, kind: input, shape index: {}]   ;;  %s1656_s2 = inlined_call_operand.hbm [shape: f32[2,256,128], index: 2, kind: output, shape index: {}]  }
   0x1   :  { %1671 = sst [smem:[#allocation20_spill]] %s1654_s0 }
   0x2   :  { %1672 = sst [smem:[#allocation21_spill]] %s1655_s1 }
   0x3   :  { %1673 = sst [smem:[#allocation22_spill]] %s1656_s2 }
   0x4   :  { %7 = vsyncpa [#allocation4], 0 }
   0x5   :  { %9 = vsyncpa [#allocation4 + $0x1], 0 }
   0x6   :  { %10 = vsyncpa [#allocation7], 0 }
   0x7   :  { %12 = vsyncpa [#allocation7 + $0x1], 0 }
   0x8   :  { %13 = vsyncpa [#allocation5], 0 }
   0x9   :  { %15 = vsyncpa [#allocation5 + $0x1], 0  ;;  %s1222_s9 = smov 0   ;;  %s1224_s10 = smov 0  }
   0xa   :  { %s1226_s11 = smov 0   ;;  %s1228_s12 = smov 0  }
   0xb   :  { %s1230_s13 = smov 0   ;;  %s1232_s14 = smov 0  }
   0xc   :  { %s1234_s15 = smov 0   ;;  %s1236_s16 = smov 0  }
   0xd   :  { %s1238_s17 = smov 0   ;;  %s1240_s18 = smov 0  }
   0xe   :  { %s1242_s19 = smov 0   ;;  %s1244_s20 = smov 0  }
   0xf   :  { %s1246_s21 = smov 0   ;;  %s1248_s22 = smov 0  }
  0x10   :  { %s1250_s23 = smov 0   ;;  %s1252_s24 = smov 0  }
  0x11 LB: > { %1674 = sst [smem:[#allocation12_spill]] %s1136_s9  ;;  %s33_s25 = sadd.s32 1, %s1184_s21  ;;  %s1196_s24 = sphi %s1252_s24, %s21_s24   ;;  %s1192_s23 = sphi %s1250_s23, %s1728_s23   ;;  %s1188_s22 = sphi %s1248_s22, %s1727_s22   ;;  %s1184_s21 = sphi %s1246_s21, %s1726_s21   ;;  %s1180_s20 = sphi %s1244_s20, %s1725_s20   ;;  %s1176_s19 = sphi %s1242_s19, %s1711_s19   ;;  %s1172_s18 = sphi %s1240_s18, %s1724_s18   ;;  %s1168_s17 = sphi %s1238_s17, %s1723_s17   ;;  %s1164_s16 = sphi %s1236_s16, %s1722_s16   ;;  %s1160_s15 = sphi %s1234_s15, %s1721_s15   ;;  %s1156_s14 = sphi %s1232_s14, %s1720_s14   ;;  %s1152_s13 = sphi %s1230_s13, %s1719_s13   ;;  %s1148_s12 = sphi %s1228_s12, %s1718_s12   ;;  %s1144_s11 = sphi %s1226_s11, %s1717_s11   ;;  %s1140_s10 = sphi %s1224_s10, %s1716_s10   ;;  %s1136_s9 = sphi %s1222_s9, %s1715_s9  }
  0x12   : > { %1675 = sst [smem:[#allocation13_spill]] %s1172_s18  ;;  %s36_s26 = sadd.s32 1, %s1188_s22 }
  0x13   : > { %1676 = sst [smem:[#allocation14_spill]] %s1176_s19  ;;  %p34_p0 = scmp.ge.s32.totalorder %s33_s25, 2 }
  0x14   : > { %1677 = sst [smem:[#allocation15_spill]] %s1180_s20  ;;  %s40_s27 = sadd.s32 1, %s1192_s23 }
  0x15   : > { %1678 = sst [smem:[#allocation16_spill]] %s1188_s22  ;;  %s51_s28 = sadd.s32 1, %s1168_s17 }
  0x16   : > { %p58_p1 = scmp.ne.s32.totalorder %s1168_s17, %s1164_s16  ;;  %s1730_s25 = smov (%p34_p0, %s33_s25), 0 }
  0x17   : > { %1679 = sst [smem:[#allocation17_spill]] %s1730_s25  ;;  %s1732_s26 = smov (!%p34_p0, %s36_s26), %s1188_s22 }
  0x18   : > { %s47_s29 = ssub.s32 %s1184_s21, %s1730_s25  ;;  %p1665_p2 = scmp.eq.s32.totalorder %s1196_s24, 0 }
  0x19   : > { %p38_p3 = scmp.ge.s32.totalorder %s1732_s26, 2  ;;  %s105_s3 = sadd.s32 1, %s1144_s11 }
  0x1a   : > { %p1318_p5 = por %p1665_p2, %p58_p1  ;;  %p1664_p7 = scmp.lt.s32.totalorder %s1196_s24, 8 }
  0x1b   : > { %s1734_s26 = smov (%p38_p3, %s1732_s26), 0  ;;  %s1736_s27 = smov (!%p38_p3, %s40_s27), %s1192_s23 }
  0x1c   : > { %1681 = sst [smem:[#allocation18_spill]] %s1734_s26  ;;  %s45_s4 = ssub.s32 %s1188_s22, %s1734_s26 }
  0x1d   : > { %p42_p6 = scmp.ge.s32.totalorder %s1736_s27, 2  ;;  %s142_s5 = sand.u32 1, %s1168_s17  }
  0x1e   : > { %s679_s6 = sshll.u32 %s1188_s22, 5  ;;  %s658_s7 = sshll.u32 %s142_s5, 7 }
  0x1f   : > { %s1738_s27 = smov (%p42_p6, %s1736_s27), 0  ;;  %s152_s26 = sadd.s32 %s1184_s21, %s679_s6 }
  0x20   : > { %1682 = sst [smem:[#allocation19_spill]] %s1738_s27  ;;  %s1335_s8 = ssub.s32 %s1192_s23, %s1738_s27 }
  0x21   : > { %s46_s25 = sor.u32 %s45_s4, %s1335_s8  ;;  %s661_s19 = sshll.u32 %s1192_s23, 6 }
  0x22   : > { %s48_s2 = sor.u32 %s47_s29, %s46_s25  ;;  %p103_p9 = scmp.eq.s32.totalorder %s46_s25, 0 }
  0x23   : > { %p49_p10 = scmp.eq.s32.totalorder %s48_s2, 0  ;;  %s146_s18 = scalar_lea.vmem [#allocation3], %s658_s7 }
  0x24   : > { %s1341_s20 = scalar_select %p103_p9, %s1144_s11, %s105_s3  }
  0x25   : > { %s1344_s22 = scalar_select %p49_p10, %s1168_s17, %s51_s28  }
  0x26   : > { %s157_s1 = sshll.u32 %s146_s18, 4  ;;  %s154_s9 = sadd.s32 %s661_s19, %s152_s26  ;;  %s1347_s1 = int_to_ptr.vmem [resolvable:$true] %s157_s1 }
  0x27   : > { %s662_s27 = sshll.u32 %s154_s9, 7  ;;  %p1353_p11 = pnand %p1664_p7, %p1318_p5 }
  0x28   : > { %s1684_s0 = sld [smem:[#allocation20_spill]]  ;;  %p666_p12 = scmp.ge.s32.totalorder %s1196_s24, 1 }
  0x29   : > { %s1363_s18 = scalar_lea.sflag [#allocation4], %s142_s5  ;;  %p972_p0 = pneg %p1353_p11 }
  0x2e   : > { %s1360_s28 = scalar_lea.hbm %s1684_s0, %s662_s27  ;;  %s975_s27 = scalar_lea.hbm %s1684_s0, 16384 }
  0x2f   : > { %s970_s9 = scalar_lea.hbm %s1360_s28, 2048  ;;  %p976_p5 = scmp.lt.u32.totalorder %s1360_s28, %s1684_s0 }
  0x30   : > { %p971_p13 = scmp.ne.s32.totalorder %s1360_s28, %s970_s9  ;;  %p977_p6 = scmp.lt.u32.totalorder %s975_s27, %s970_s9 }
  0x31   : > { %p979_p10 = scmp.lt.u32.totalorder %s970_s9, %s1360_s28 }
  0x32   : > { %p973_p1 = pnand %p972_p0, %p971_p13  ;;  %p978_p9 = por %p977_p6, %p976_p5 }
  0x34   : > { %p974_p3 = pneg %p973_p1  ;;  %p980_p7 = por %p979_p10, %p978_p9 }
  0x36   : > { %p981_p2 = pnand %p980_p7, %p974_p3 }
  0x38   : > { %984 = shalt.err (!%p981_p2)
}
  0x39   : > { %s985_s3 = scalar_lea.vmem %s1347_s1, 2048  ;;  %s1198_s5 = smov [#allocation3]  }
  0x3a   : > { %p986_p13 = scmp.ne.s32.totalorder %s1347_s1, %s985_s3  ;;  %s990_s6 = sshll.u32 %s1198_s5, 4  ;;  %s991_s6 = int_to_ptr.vmem [resolvable:$false] %s990_s6 }
  0x3b   : > { %s992_s7 = scalar_lea.vmem %s991_s6, 4096  ;;  %p993_p8 = scmp.lt.s32.totalorder %s1347_s1, %s991_s6 }
  0x3c   : > { %p988_p1 = pnand %p986_p13, %p972_p0  ;;  %p994_p5 = scmp.lt.s32.totalorder %s992_s7, %s985_s3 }
  0x3e   : > { %p989_p4 = pneg %p988_p1  ;;  %p995_p6 = por %p994_p5, %p993_p8 }
  0x40   : > { %p996_p9 = pnand %p995_p6, %p989_p4 }
  0x42   : > { %999 = shalt.err (!%p996_p9)
}
  0x43   : > { %s1199_s25 = smov 256   ;;  %s1666_s2 = smov 128  }
  0x44   : > { %s1667_s9 = smov 8   ;;  %s1685_s19 = sld [smem:[#allocation12_spill]] }
  0x45   : > { %826 = dma.hbm_to_vmem [thread:$0]  (!%p1353_p11), %s1360_s28, 2048, %s1347_s1, %s1363_s18, %s1199_s25, %s1666_s2, %s1667_s9  }
  0x46   : > { %p186_p2 = scmp.lt.s32.totalorder %s1196_s24, 9  ;;  %s654_s27 = sadd.s32 4294967295, %s1196_s24  }
  0x47   : > { %s655_s29 = sadd.s32 4294967294, %s1196_s24   ;;  %p65_p7 = scmp.eq.s32.totalorder %s654_s27, 0 }
  0x48   : > { %p1396_p4 = pnand %p666_p12, %p186_p2  ;;  %s77_s30 = sadd.s32 1, %s1156_s14 }
  0x49   : > { %p1687_p8 = scmp.eq.s32.totalorder %s1335_s8, 0  ;;  %p1688_p0 = scmp.ne.s32.totalorder %s1164_s16, %s1160_s15 }
  0x4a   : > { %p84_p11 = scmp.ne.s32.totalorder %s1156_s14, %s1152_s13  ;;  %p90_p12 = scmp.ne.s32.totalorder %s1152_s13, %s1148_s12 }
  0x4b   : > { %s1406_s3 = scalar_select %p1687_p8, %s1156_s14, %s77_s30  }
  0x4c   : > { %p1411_p3 = por %p65_p7, %p1688_p0  ;;  %p115_p10 = scmp.ne.s32.totalorder %s1144_s11, %s1140_s10 }
  0x4d   : > { %p1690_p13 = scmp.eq.s32.totalorder %s1196_s24, 0  ;;  %p116_p5 = scmp.eq.s32.totalorder %s654_s27, 7 }
  0x4e   : > { %s1689_s4 = scalar_select %p1411_p3, 1, 0 }
  0x4f   : > { %p86_p1 = por %p84_p11, %p1690_p13  ;;  %p1423_p6 = por %p90_p12, %p65_p7 }
  0x50   : > { %p121_p9 = scmp.ne.s32.totalorder %s1140_s10, %s1685_s19  ;;  %p1429_p2 = por %p116_p5, %p115_p10 }
  0x51   : > { %s1691_s1 = scalar_select %p1423_p6, 1, 0 }
  0x52   : > { %s1692_s8 = scalar_select %p1429_p2, 1, 0 }
  0x53   : > { %p122_p8 = scmp.eq.s32.totalorder %s655_s29, 7  ;;  %s167_s15 = sand.u32 1, %s1156_s14  }
  0x54   : > { %s680_s28 = sshll.u32 %s1192_s23, 12  ;;  %s663_s12 = sshll.u32 %s167_s15, 8 }
  0x55   : > { %p1435_p0 = por %p122_p8, %p121_p9  ;;  %s1694_s7 = sld [smem:[#allocation21_spill]] }
  0x56   : > { %p1695_p7 = scmp.lt.s32.totalorder %s1196_s24, 8  ;;  %s171_s27 = scalar_lea.vmem [#allocation6], %s663_s12 }
  0x57   : > { %s1693_s18 = scalar_select %p1435_p0, 1, 0 }
  0x58   : > { %p1446_p11 = pnand %p1695_p7, %p86_p1  ;;  %s178_s29 = sshll.u32 %s171_s27, 4  ;;  %s1450_s29 = int_to_ptr.vmem [resolvable:$true] %s178_s29 }
  0x59   : > { %s1452_s30 = scalar_lea.sflag [#allocation7], %s167_s15 }
  0x5a   : > { %p1002_p10 = pneg %p1446_p11 }
  0x5b   : > { %s1442_s25 = scalar_lea.hbm %s1694_s7, %s680_s28  ;;  %s1005_s2 = scalar_lea.hbm %s1694_s7, 8192 }
  0x5c   : > { %s1000_s5 = scalar_lea.hbm %s1442_s25, 4096  ;;  %p1006_p1 = scmp.lt.u32.totalorder %s1442_s25, %s1694_s7 }
  0x5d   : > { %p1001_p12 = scmp.ne.s32.totalorder %s1442_s25, %s1000_s5  ;;  %p1007_p9 = scmp.lt.u32.totalorder %s1005_s2, %s1000_s5 }
  0x5e   : > { %p1009_p7 = scmp.lt.u32.totalorder %s1000_s5, %s1442_s25 }
  0x5f   : > { %p1003_p13 = pnand %p1002_p10, %p1001_p12  ;;  %p1008_p8 = por %p1007_p9, %p1006_p1 }
  0x61   : > { %p1004_p5 = pneg %p1003_p13  ;;  %p1010_p0 = por %p1009_p7, %p1008_p8 }
  0x63   : > { %p1011_p2 = pnand %p1010_p0, %p1004_p5 }
  0x65   : > { %1014 = shalt.err (!%p1011_p2)
}
  0x66   : > { %s1015_s15 = scalar_lea.vmem %s1450_s29, 4096  ;;  %s1202_s12 = smov [#allocation6]  }
  0x67   : > { %p1016_p12 = scmp.ne.s32.totalorder %s1450_s29, %s1015_s15  ;;  %s1020_s27 = sshll.u32 %s1202_s12, 4  ;;  %s1021_s27 = int_to_ptr.vmem [resolvable:$false] %s1020_s27 }
  0x68   : > { %s1022_s0 = scalar_lea.vmem %s1021_s27, 8192  ;;  %p1023_p3 = scmp.lt.s32.totalorder %s1450_s29, %s1021_s27 }
  0x69   : > { %p1018_p13 = pnand %p1016_p12, %p1002_p10  ;;  %p1024_p1 = scmp.lt.s32.totalorder %s1022_s0, %s1015_s15 }
  0x6b   : > { %p1019_p6 = pneg %p1018_p13  ;;  %p1025_p9 = por %p1024_p1, %p1023_p3 }
  0x6d   : > { %p1026_p8 = pnand %p1025_p9, %p1019_p6 }
  0x6f   : > { %1029 = shalt.err (!%p1026_p8)
}
  0x70   : > { %s1697_s2 = smov 8   ;;  %s1698_s9 = smov 128  }
  0x71   : > { %829 = dma.hbm_to_vmem [thread:$0]  (!%p1446_p11), %s1442_s25, 4096, %s1450_s29, %s1452_s30, %s1698_s9, %s1698_s9, %s1697_s2  }
  0x72   : > { %190 = sbr.rel (%p1396_p4) target bundleno = 452 (0x1c4), region = 28  ;;  %s192_s5 = sand.u32 (!%p1396_p4), 1, %s1164_s16  }
  0x73   : > { %s667_s28 = sshll.u32 (!%p1396_p4), %s192_s5, 7  ;;  %s193_s6 = scalar_lea.sflag (!%p1396_p4), [#allocation4], %s192_s5 }
  0x74   : > { %s1486_s15 = scalar_lea.vmem (!%p1396_p4), [#allocation3], %s667_s28  ;;  %p1699_p3 = scmp.ne.s32.totalorder (!%p1396_p4), %s1689_s4, 0 }
  0x79   : > { %1123 = dma.done.wait (%p1699_p3), %s193_s6, 2048  }
  0x7a   : > { %1125 = vsyncadd (%p1699_p3), %s193_s6, 4294965248  ;;  %s201_s19 = sand.u32 1, %s1152_s13   ;;  %p1700_p4 = scmp.ne.s32.totalorder %s1691_s1, 0 }
  0x7b   : > { %s1493_s12 = sshll.u32 %s201_s19, 8  ;;  %s202_s26 = scalar_lea.sflag [#allocation7], %s201_s19 }
  0x7c   : > { %s205_s25 = scalar_lea.vmem [#allocation6], %s1493_s12 }
  0x7d   : > { %1127 = dma.done.wait (%p1700_p4), %s202_s26, 4096  }
  0x7e   : > { %1129 = vsyncadd (%p1700_p4), %s202_s26, 4294963200  ;;  %s228_s29 = sand.u32 1, %s1140_s10   ;;  %s1701_s27 = sld [smem:[#allocation13_spill]] }
  0x7f   : > { %s669_s30 = sshll.u32 %s228_s29, 7 }
  0x80   : > { %s1503_s4 = scalar_lea.vmem [#allocation8], %s669_s30 }
  0x84   : > { %p670_p6 = scmp.ne.s32.totalorder %s1701_s27, 0 }
  0x85   : > { %v1203_v0 = vmov (!%p670_p6), 0.0  }
  0x86   : > { %236 = sbr.rel (%p670_p6) target bundleno = 142 (0x8e), region = 40  ;;  %237 = vst [vmem:[#allocation2] sm:$0xff] (!%p670_p6), %v1203_v0  ;;  %238 = vst [vmem:[#allocation2 + $0x8] sm:$0xff] (!%p670_p6), %v1203_v0 }
  0x87   : > { %239 = vst [vmem:[#allocation2 + $0x10] sm:$0xff] (!%p670_p6), %v1203_v0  ;;  %240 = vst [vmem:[#allocation2 + $0x18] sm:$0xff] (!%p670_p6), %v1203_v0 }
  0x88   : > { %241 = vst [vmem:[#allocation2 + $0x20] sm:$0xff] (!%p670_p6), %v1203_v0  ;;  %242 = vst [vmem:[#allocation2 + $0x28] sm:$0xff] (!%p670_p6), %v1203_v0 }
  0x89   : > { %243 = vst [vmem:[#allocation2 + $0x30] sm:$0xff] (!%p670_p6), %v1203_v0  ;;  %244 = vst [vmem:[#allocation2 + $0x38] sm:$0xff] (!%p670_p6), %v1203_v0 }
  0x8a   : > { %245 = vst [vmem:[#allocation2 + $0x40] sm:$0xff] (!%p670_p6), %v1203_v0  ;;  %246 = vst [vmem:[#allocation2 + $0x48] sm:$0xff] (!%p670_p6), %v1203_v0 }
  0x8b   : > { %247 = vst [vmem:[#allocation2 + $0x50] sm:$0xff] (!%p670_p6), %v1203_v0  ;;  %248 = vst [vmem:[#allocation2 + $0x58] sm:$0xff] (!%p670_p6), %v1203_v0 }
  0x8c   : > { %249 = vst [vmem:[#allocation2 + $0x60] sm:$0xff] (!%p670_p6), %v1203_v0  ;;  %250 = vst [vmem:[#allocation2 + $0x68] sm:$0xff] (!%p670_p6), %v1203_v0 }
  0x8d   : > { %251 = vst [vmem:[#allocation2 + $0x70] sm:$0xff] %v1203_v0  ;;  %252 = vst [vmem:[#allocation2 + $0x78] sm:$0xff] %v1203_v0 }
  0x8e PF: > { %s1702_s1 = sld [smem:[#allocation13_spill]]  ;;  %v253_v1 = vld [vmem:[%s1486_s15] sm:$0xff]  ;;  %v254_v27 = vld [vmem:[%s1486_s15 + $0x8] sm:$0xff]  ;;  %v255_v29 = vld [vmem:[%s1486_s15 + $0x10] sm:$0xff] }
  0x8f   : > { %v261_v2 = vld [vmem:[%s1486_s15 + $0x40] sm:$0xff]  ;;  %745 = vmatprep.mubr.f32.mxu0 %v253_v1  ;;  %v262_v28 = vld [vmem:[%s1486_s15 + $0x48] sm:$0xff]  ;;  %v263_v30 = vld [vmem:[%s1486_s15 + $0x50] sm:$0xff] }
  0x90   : > { %757 = vmatprep.mubr.f32.mxu1 %v261_v2  ;;  %v256_v31 = vld [vmem:[%s1486_s15 + $0x18] sm:$0xff]  ;;  %v257_v33 = vld [vmem:[%s1486_s15 + $0x20] sm:$0xff]  ;;  %v258_v35 = vld [vmem:[%s1486_s15 + $0x28] sm:$0xff] }
  0x91   : > { %v264_v32 = vld [vmem:[%s1486_s15 + $0x58] sm:$0xff]  ;;  %v265_v34 = vld [vmem:[%s1486_s15 + $0x60] sm:$0xff]  ;;  %v266_v36 = vld [vmem:[%s1486_s15 + $0x68] sm:$0xff] }
  0x92   : > { %v259_v37 = vld [vmem:[%s1486_s15 + $0x30] sm:$0xff]  ;;  %v260_v39 = vld [vmem:[%s1486_s15 + $0x38] sm:$0xff]  ;;  %v288_v41 = vld [vmem:[#allocation2 + $0x8] sm:$0xff] }
  0x93   : > { %v267_v38 = vld [vmem:[%s1486_s15 + $0x70] sm:$0xff]  ;;  %v268_v40 = vld [vmem:[%s1486_s15 + $0x78] sm:$0xff]  ;;  %v296_v42 = vld [vmem:[#allocation2 + $0x48] sm:$0xff] }
  0x94   : > { %s671_s0 = sshll.u32 %s1702_s1, 7  ;;  %v287_v43 = vld [vmem:[#allocation2] sm:$0xff]  ;;  %v290_v53 = vld [vmem:[#allocation2 + $0x18] sm:$0xff]  ;;  %v289_v55 = vld [vmem:[#allocation2 + $0x10] sm:$0xff]  ;;  %p672_p2 = scmp.ne.s32.totalorder %s1702_s1, 1 }
  0x95   : > { %s1511_s2 = scalar_lea.vmem %s205_s25, %s671_s0 [#allocation6]  ;;  %v295_v44 = vld [vmem:[#allocation2 + $0x40] sm:$0xff]  ;;  %v298_v54 = vld [vmem:[#allocation2 + $0x58] sm:$0xff]  ;;  %v297_v56 = vld [vmem:[#allocation2 + $0x50] sm:$0xff] }
  0x96   : > { %v271_v3 = vld [vmem:[%s1511_s2] sm:$0xff]  ;;  %v272_v4 = vld [vmem:[%s1511_s2 + $0x8] sm:$0xff]  ;;  %v273_v5 = vld [vmem:[%s1511_s2 + $0x10] sm:$0xff] }
  0x97   : > { %v769_v6 = vpack.c.bf16 %v272_v4, %v271_v3  ;;  %v274_v7 = vld [vmem:[%s1511_s2 + $0x18] sm:$0xff]  ;;  %v275_v9 = vld [vmem:[%s1511_s2 + $0x20] sm:$0xff]  ;;  %v276_v10 = vld [vmem:[%s1511_s2 + $0x28] sm:$0xff] }
  0x98   : > { %v773_v8 = vpack.c.bf16 %v274_v7, %v273_v5  ;;  %v777_v11 = vpack.c.bf16 %v276_v10, %v275_v9  ;;  %v277_v12 = vld [vmem:[%s1511_s2 + $0x30] sm:$0xff]  ;;  %v278_v13 = vld [vmem:[%s1511_s2 + $0x38] sm:$0xff]  ;;  %v279_v15 = vld [vmem:[%s1511_s2 + $0x40] sm:$0xff] }
  0x99   : > { %770 = vmatprep.subr.bf16.mxu0 %v769_v6  ;;  %801 = vmatprep.subr.bf16.mxu1 %v769_v6  ;;  %v781_v14 = vpack.c.bf16 %v278_v13, %v277_v12  ;;  %v280_v16 = vld [vmem:[%s1511_s2 + $0x48] sm:$0xff]  ;;  %v281_v18 = vld [vmem:[%s1511_s2 + $0x50] sm:$0xff]  ;;  %v282_v19 = vld [vmem:[%s1511_s2 + $0x58] sm:$0xff] }
  0x9a   : > { %772 = vmatpush3.bf16.msra.mxu0 %v769_v6  ;;  %809 = vmatpush3.bf16.msra.mxu1 %v769_v6  ;;  %v785_v17 = vpack.c.bf16 %v280_v16, %v279_v15  ;;  %v789_v20 = vpack.c.bf16 %v282_v19, %v281_v18  ;;  %v283_v21 = vld [vmem:[%s1511_s2 + $0x60] sm:$0xff]  ;;  %v284_v22 = vld [vmem:[%s1511_s2 + $0x68] sm:$0xff]  ;;  %v285_v24 = vld [vmem:[%s1511_s2 + $0x70] sm:$0xff] }
  0x9b   : > { %774 = vmatprep.subr.bf16.mxu0 %v773_v8  ;;  %802 = vmatprep.subr.bf16.mxu1 %v773_v8  ;;  %v793_v23 = vpack.c.bf16 %v284_v22, %v283_v21  ;;  %v286_v25 = vld [vmem:[%s1511_s2 + $0x78] sm:$0xff]  ;;  %v292_v1 = vld [vmem:[#allocation2 + $0x28] sm:$0xff]  ;;  %v291_v3 = vld [vmem:[#allocation2 + $0x20] sm:$0xff] }
  0x9c   : > { %v797_v26 = vpack.c.bf16 %v286_v25, %v285_v24  ;;  %v300_v2 = vld [vmem:[#allocation2 + $0x68] sm:$0xff]  ;;  %v299_v4 = vld [vmem:[#allocation2 + $0x60] sm:$0xff]  ;;  %v294_v13 = vld [vmem:[#allocation2 + $0x38] sm:$0xff] }
  0x9d   : > { %v293_v15 = vld [vmem:[#allocation2 + $0x30] sm:$0xff] }
  0x9e   : > { %776 = vmatpush3.bf16.msra.mxu0 %v773_v8  ;;  %810 = vmatpush3.bf16.msra.mxu1 %v773_v8  ;;  %v301_v16 = vld [vmem:[#allocation2 + $0x70] sm:$0xff] }
  0x9f   : > { %778 = vmatprep.subr.bf16.mxu0 %v777_v11  ;;  %803 = vmatprep.subr.bf16.mxu1 %v777_v11 }
  0xa2   : > { %780 = vmatpush3.bf16.msra.mxu0 %v777_v11  ;;  %811 = vmatpush3.bf16.msra.mxu1 %v777_v11 }
  0xa3   : > { %782 = vmatprep.subr.bf16.mxu0 %v781_v14  ;;  %804 = vmatprep.subr.bf16.mxu1 %v781_v14 }
  0xa6   : > { %784 = vmatpush3.bf16.msra.mxu0 %v781_v14  ;;  %812 = vmatpush3.bf16.msra.mxu1 %v781_v14  ;;  %v302_v14 = vld [vmem:[#allocation2 + $0x78] sm:$0xff] }
  0xa7   : > { %786 = vmatprep.subr.bf16.mxu0 %v785_v17  ;;  %805 = vmatprep.subr.bf16.mxu1 %v785_v17 }
  0xaa   : > { %788 = vmatpush3.bf16.msra.mxu0 %v785_v17  ;;  %813 = vmatpush3.bf16.msra.mxu1 %v785_v17 }
  0xab   : > { %790 = vmatprep.subr.bf16.mxu0 %v789_v20  ;;  %806 = vmatprep.subr.bf16.mxu1 %v789_v20 }
  0xae   : > { %792 = vmatpush3.bf16.msra.mxu0 %v789_v20  ;;  %814 = vmatpush3.bf16.msra.mxu1 %v789_v20 }
  0xaf   : > { %794 = vmatprep.subr.bf16.mxu0 %v793_v23  ;;  %807 = vmatprep.subr.bf16.mxu1 %v793_v23 }
  0xb2   : > { %796 = vmatpush3.bf16.msra.mxu0 %v793_v23  ;;  %815 = vmatpush3.bf16.msra.mxu1 %v793_v23 }
  0xb3   : > { %798 = vmatprep.subr.bf16.mxu0 %v797_v26  ;;  %808 = vmatprep.subr.bf16.mxu1 %v797_v26 }
  0xb6   : > { %800 = vmatpush3.bf16.msra.mxu0 %v797_v26  ;;  %816 = vmatpush3.bf16.msra.mxu1 %v797_v26 }
  0xb9   : > { %746 = vmatmul.mubr.f32.vlgmr.msra.gmra.mrb[0].mxu0 %v254_v27  ;;  %758 = vmatmul.mubr.f32.vlgmr.msra.gmra.mrb[0].mxu1 %v262_v28 }
  0xba   : > { %748 = vmatprep.mubr.f32.mxu0 %v255_v29  ;;  %760 = vmatprep.mubr.f32.mxu1 %v263_v30 }
  0xbd   : > { %749 = vmatmul.mubr.f32.gmra.mrb[2].mxu0 %v256_v31  ;;  %761 = vmatmul.mubr.f32.gmra.mrb[2].mxu1 %v264_v32 }
  0xbe   : > { %751 = vmatprep.mubr.f32.mxu0 %v257_v33  ;;  %763 = vmatprep.mubr.f32.mxu1 %v265_v34 }
  0xc1   : > { %752 = vmatmul.mubr.f32.gmra.mrb[4].mxu0 %v258_v35  ;;  %764 = vmatmul.mubr.f32.gmra.mrb[4].mxu1 %v266_v36 }
  0xc2   : > { %754 = vmatprep.mubr.f32.mxu0 %v259_v37  ;;  %766 = vmatprep.mubr.f32.mxu1 %v267_v38 }
  0xc5   : > { %755 = vmatmul.mubr.f32.gmra.mrb[6].mxu0 %v260_v39  ;;  %767 = vmatmul.mubr.f32.gmra.mrb[6].mxu1 %v268_v40 }
 0x18c   : > { %v747_v45 = vpop.f32.mrb[0].mxu0  ;;  %v759_v46 = vpop.f32.mrb[0].mxu1 }
 0x18d   : > { %v449_v47 = vadd.f32 %v747_v45, %v288_v41  ;;  %v457_v48 = vadd.f32 %v759_v46, %v296_v42  ;;  %v369_v49 = vpop.f32.mrb[1].mxu0  ;;  %v409_v50 = vpop.f32.mrb[1].mxu1 }
 0x18e   : > { %v448_v51 = vadd.f32 %v369_v49, %v287_v43  ;;  %v456_v52 = vadd.f32 %v409_v50, %v295_v44 }
 0x18f   : > { %465 = vst [vmem:[#allocation2 + $0x8] sm:$0xff] %v449_v47  ;;  %473 = vst [vmem:[#allocation2 + $0x48] sm:$0xff] %v457_v48 }
 0x190   : > { %464 = vst [vmem:[#allocation2] sm:$0xff] %v448_v51  ;;  %472 = vst [vmem:[#allocation2 + $0x40] sm:$0xff] %v456_v52  ;;  %v750_v57 = vpop.f32.mrb[2].mxu0  ;;  %v762_v58 = vpop.f32.mrb[2].mxu1 }
 0x191   : > { %v451_v59 = vadd.f32 %v750_v57, %v290_v53  ;;  %v459_v60 = vadd.f32 %v762_v58, %v298_v54  ;;  %v379_v61 = vpop.f32.mrb[3].mxu0  ;;  %v419_v62 = vpop.f32.mrb[3].mxu1 }
 0x192   : > { %v450_v63 = vadd.f32 %v379_v61, %v289_v55  ;;  %v458_v0 = vadd.f32 %v419_v62, %v297_v56 }
 0x193   : > { %467 = vst [vmem:[#allocation2 + $0x18] sm:$0xff] %v451_v59  ;;  %475 = vst [vmem:[#allocation2 + $0x58] sm:$0xff] %v459_v60 }
 0x194   : > { %466 = vst [vmem:[#allocation2 + $0x10] sm:$0xff] %v450_v63  ;;  %474 = vst [vmem:[#allocation2 + $0x50] sm:$0xff] %v458_v0  ;;  %v753_v5 = vpop.f32.mrb[4].mxu0  ;;  %v765_v6 = vpop.f32.mrb[4].mxu1 }
 0x195   : > { %v453_v7 = vadd.f32 %v753_v5, %v292_v1  ;;  %v461_v8 = vadd.f32 %v765_v6, %v300_v2  ;;  %v389_v9 = vpop.f32.mrb[5].mxu0  ;;  %v429_v10 = vpop.f32.mrb[5].mxu1 }
 0x196   : > { %v452_v11 = vadd.f32 %v389_v9, %v291_v3  ;;  %v460_v12 = vadd.f32 %v429_v10, %v299_v4  ;;  %483 = sbr.rel (%p672_p2) target bundleno = 422 (0x1a6), region = 44  ;;  %v485_v26 = vld [vmem:[#allocation2 + $0x8] sm:$0xff] (!%p672_p2) }
 0x197   : > { %469 = vst [vmem:[#allocation2 + $0x28] sm:$0xff] %v453_v7  ;;  %477 = vst [vmem:[#allocation2 + $0x68] sm:$0xff] %v461_v8  ;;  %v484_v25 = vld [vmem:[#allocation2] sm:$0xff] (!%p672_p2)  ;;  %v493_v34 = vld [vmem:[#allocation2 + $0x48] sm:$0xff] (!%p672_p2) }
 0x198   : > { %468 = vst [vmem:[#allocation2 + $0x20] sm:$0xff] %v452_v11  ;;  %476 = vst [vmem:[#allocation2 + $0x60] sm:$0xff] %v460_v12  ;;  %v756_v17 = vpop.f32.mrb[6].mxu0  ;;  %v768_v18 = vpop.f32.mrb[6].mxu1  ;;  %v492_v33 = vld [vmem:[#allocation2 + $0x40] sm:$0xff] (!%p672_p2) }
 0x199   : > { %v455_v19 = vadd.f32 %v756_v17, %v294_v13  ;;  %v463_v20 = vadd.f32 %v768_v18, %v302_v14  ;;  %v399_v21 = vpop.f32.mrb[7].mxu0  ;;  %v439_v22 = vpop.f32.mrb[7].mxu1  ;;  %500 = vst [vmem:[%s1503_s4] sm:$0xff] (!%p672_p2), %v484_v25  ;;  %501 = vst [vmem:[%s1503_s4 + $0x8] sm:$0xff] (!%p672_p2), %v485_v26 }
 0x19a   : > { %v454_v23 = vadd.f32 %v399_v21, %v293_v15  ;;  %v462_v24 = vadd.f32 %v439_v22, %v301_v16  ;;  %v487_v28 = vld [vmem:[#allocation2 + $0x18] sm:$0xff] (!%p672_p2)  ;;  %508 = vst [vmem:[%s1503_s4 + $0x40] sm:$0xff] (!%p672_p2), %v492_v33  ;;  %509 = vst [vmem:[%s1503_s4 + $0x48] sm:$0xff] (!%p672_p2), %v493_v34 }
 0x19b   : > { %471 = vst [vmem:[#allocation2 + $0x38] sm:$0xff] %v455_v19  ;;  %479 = vst [vmem:[#allocation2 + $0x78] sm:$0xff] %v463_v20  ;;  %v486_v27 = vld [vmem:[#allocation2 + $0x10] sm:$0xff] (!%p672_p2)  ;;  %v495_v36 = vld [vmem:[#allocation2 + $0x58] sm:$0xff] (!%p672_p2) }
 0x19c   : > { %470 = vst [vmem:[#allocation2 + $0x30] sm:$0xff] %v454_v23  ;;  %478 = vst [vmem:[#allocation2 + $0x70] sm:$0xff] %v462_v24  ;;  %v494_v35 = vld [vmem:[#allocation2 + $0x50] sm:$0xff] (!%p672_p2) }
 0x19d   : > { %502 = vst [vmem:[%s1503_s4 + $0x10] sm:$0xff] %v486_v27  ;;  %503 = vst [vmem:[%s1503_s4 + $0x18] sm:$0xff] %v487_v28 }
 0x19e   : > { %v489_v30 = vld [vmem:[#allocation2 + $0x28] sm:$0xff]  ;;  %510 = vst [vmem:[%s1503_s4 + $0x50] sm:$0xff] %v494_v35  ;;  %511 = vst [vmem:[%s1503_s4 + $0x58] sm:$0xff] %v495_v36 }
 0x19f   : > { %v488_v29 = vld [vmem:[#allocation2 + $0x20] sm:$0xff]  ;;  %505 = vst [vmem:[%s1503_s4 + $0x28] sm:$0xff] %v489_v30  ;;  %v497_v38 = vld [vmem:[#allocation2 + $0x68] sm:$0xff] }
 0x1a0   : > { %504 = vst [vmem:[%s1503_s4 + $0x20] sm:$0xff] %v488_v29  ;;  %v496_v37 = vld [vmem:[#allocation2 + $0x60] sm:$0xff]  ;;  %513 = vst [vmem:[%s1503_s4 + $0x68] sm:$0xff] %v497_v38 }
 0x1a1   : > { %512 = vst [vmem:[%s1503_s4 + $0x60] sm:$0xff] %v496_v37 }
 0x1a2   : > { %v491_v32 = vld [vmem:[#allocation2 + $0x38] sm:$0xff] }
 0x1a3   : > { %v490_v31 = vld [vmem:[#allocation2 + $0x30] sm:$0xff]  ;;  %507 = vst [vmem:[%s1503_s4 + $0x38] sm:$0xff] %v491_v32  ;;  %v499_v40 = vld [vmem:[#allocation2 + $0x78] sm:$0xff] }
 0x1a4   : > { %506 = vst [vmem:[%s1503_s4 + $0x30] sm:$0xff] %v490_v31  ;;  %v498_v39 = vld [vmem:[#allocation2 + $0x70] sm:$0xff]  ;;  %515 = vst [vmem:[%s1503_s4 + $0x78] sm:$0xff] %v499_v40 }
 0x1a5   : > { %514 = vst [vmem:[%s1503_s4 + $0x70] sm:$0xff] %v498_v39 }
 0x1a6 PF: > { %s1703_s9 = sld [smem:[#allocation14_spill]]  ;;  %s1704_s5 = sld [smem:[#allocation15_spill]] }
 0x1a7   : > { %s532_s15 = sshll.u32 %s1503_s4, 4  ;;  %s1705_s30 = sld [smem:[#allocation22_spill]]  ;;  %s1563_s15 = int_to_ptr.vmem [resolvable:$true] %s532_s15 }
 0x1a8   : > { %s1572_s1 = scalar_lea.sflag [#allocation5], %s228_s29  ;;  %s1030_s0 = scalar_lea.vmem %s1563_s15, 2048 }
 0x1a9   : > { %p1031_p0 = scmp.ne.s32.totalorder %s1563_s15, %s1030_s0  ;;  %p1706_p11 = scmp.ne.s32.totalorder %s1692_s8, 0 }
 0x1aa   : > { %s1204_s4 = smov [#allocation8]  }
 0x1ab   : > { %p1032_p10 = pnand %p1031_p0, %p1706_p11  ;;  %s1034_s2 = sshll.u32 %s1204_s4, 4  ;;  %s1035_s2 = int_to_ptr.vmem [resolvable:$false] %s1034_s2 }
 0x1ac   : > { %s674_s28 = sshll.u32 %s1703_s9, 4  ;;  %s675_s6 = sshll.u32 %s1704_s5, 5 }
 0x1ad   : > { %s529_s19 = sadd.s32 %s675_s6, %s674_s28  ;;  %p1033_p5 = pneg %p1032_p10 }
 0x1ae   : > { %s676_s12 = sshll.u32 %s529_s19, 7  ;;  %s1036_s9 = scalar_lea.vmem %s1035_s2, 4096 }
 0x1af   : > { %s1568_s27 = scalar_lea.hbm %s1705_s30, %s676_s12  ;;  %p1037_p7 = scmp.lt.s32.totalorder %s1563_s15, %s1035_s2 }
 0x1b0   : > { %p1038_p12 = scmp.lt.s32.totalorder %s1036_s9, %s1030_s0 }
 0x1b2   : > { %p1039_p13 = por %p1038_p12, %p1037_p7 }
 0x1b4   : > { %p1040_p1 = pnand %p1039_p13, %p1033_p5 }
 0x1b6   : > { %1043 = shalt.err (!%p1040_p1)
}
 0x1b7   : > { %s1044_s29 = scalar_lea.hbm %s1568_s27, 2048  ;;  %s1048_s6 = scalar_lea.hbm %s1705_s30, 8192 }
 0x1b8   : > { %p1045_p9 = scmp.ne.s32.totalorder %s1568_s27, %s1044_s29  ;;  %p1049_p4 = scmp.lt.u32.totalorder %s1568_s27, %s1705_s30 }
 0x1b9   : > { %p1050_p6 = scmp.lt.u32.totalorder %s1048_s6, %s1044_s29  ;;  %p1052_p0 = scmp.lt.u32.totalorder %s1044_s29, %s1568_s27 }
 0x1ba   : > { %p1046_p8 = pnand %p1045_p9, %p1706_p11 }
 0x1bb   : > { %p1051_p2 = por %p1050_p6, %p1049_p4 }
 0x1bc   : > { %p1047_p3 = pneg %p1046_p8 }
 0x1bd   : > { %p1053_p10 = por %p1052_p0, %p1051_p2 }
 0x1bf   : > { %p1054_p5 = pnand %p1053_p10, %p1047_p3 }
 0x1c1   : > { %1057 = shalt.err (!%p1054_p5)
}
 0x1c2   : > { %s1205_s26 = smov 128   ;;  %s1206_s25 = smov 8  }
 0x1c3   : > { %821 = dma.vmem_to_hbm [thread:$0]  (%p1706_p11), %s1563_s15, 2048, %s1568_s27, %s1572_s1, %s1205_s26, %s1205_s26, %s1206_s25  }
 0x1c4 PF: > { %s1707_s0 = sld [smem:[#allocation12_spill]]  ;;  %p835_p7 = scmp.ge.s32.totalorder %s1196_s24, 2 }
 0x1c5   : > { %p1708_p12 = scmp.ne.s32.totalorder %s1693_s18, 0 }
 0x1c7   : > { %p831_p13 = pnand %p835_p7, %p1708_p12 }
 0x1ca   : > { %s547_s4 = sand.u32 1, %s1707_s0  }
 0x1cb   : > { %s548_s2 = scalar_lea.sflag [#allocation5], %s547_s4 }
 0x1cc   : > { %1131 = dma.done.wait (!%p831_p13), %s548_s2, 2048  }
 0x1cd   : > { %1133 = vsyncadd (!%p831_p13), %s548_s2, 4294965248  ;;  %s21_s24 = sadd.s32 1, %s1196_s24   ;;  %s1711_s19 = sld [smem:[#allocation16_spill]] }
 0x1ce   : > { %p1601_p1 = scmp.ge.s32.totalorder %s21_s24, 10   ;;  %s1712_s8 = sld [smem:[#allocation17_spill]] }
 0x1cf   : > { %s1713_s27 = sld [smem:[#allocation18_spill]]  ;;  %s1714_s1 = sld [smem:[#allocation19_spill]] }
 0x1d0   : > { %s1715_s9 = smov %s1140_s10  ;;  %s1716_s10 = smov %s1144_s11 }
 0x1d1   : > { %s1717_s11 = smov %s1341_s20  ;;  %s1718_s12 = smov %s1152_s13 }
 0x1d2   : > { %s1719_s13 = smov %s1156_s14  ;;  %s1720_s14 = smov %s1406_s3 }
 0x1d3   : > { %s1721_s15 = smov %s1164_s16  ;;  %s1722_s16 = smov %s1168_s17 }
 0x1d4   : > { %s1723_s17 = smov %s1344_s22  ;;  %s1724_s18 = smov %s1184_s21 }
 0x1d5   : > { %s1725_s20 = smov %s1192_s23  ;;  %s1726_s21 = smov %s1712_s8 }
 0x1d6   : > { %s1727_s22 = smov %s1713_s27  ;;  %s1728_s23 = smov %s1714_s1 }
 0x1d7   :  { %20 = sbr.rel (!%p1601_p1) target bundleno = 17 (0x11), region = 95 }
 0x1de   :  { %553 = vsyncpa [#allocation4], 1 }
 0x1df   :  { %555 = vsyncpa [#allocation4 + $0x1], 1 }
 0x1e0   :  { %556 = vsyncpa [#allocation7], 1 }
 0x1e1   :  { %558 = vsyncpa [#allocation7 + $0x1], 1 }
 0x1e2   :  { %559 = vsyncpa [#allocation5], 1 }
 0x1e3   :  { %561 = vsyncpa [#allocation5 + $0x1], 1 }

</bundles_post_ra>
